<compile_context>
chip_gen: v7x
topology: tpu7x:2x2x1
jax: 0.10.0
libtpu: 0.0.40
codegen_flags: <defaults>
</compile_context>

<pallas_src>
import numpy as np
import jax
import jax.numpy as jnp
from jax.experimental import pallas as pl
from jax.experimental.pallas import tpu as pltpu

# ----------------------- problem sizes (small, synthetic) -------------------
N = 16          # num_nodes
FEAT = 8        # num_features
C = 4           # num_classes
H = 32          # hidden
M = 16          # memory_hidden
K = 8           # number of memory slots
LOCAL_STAT_NUM = 4
PPR_ALPHA = 0.15

IN_DIM = FEAT + C + C * FEAT + N        # 60 = [x | nnl | nfl | diff] feature width
IN_PAD = 64                             # lane padding for the fused layer-1 matmul
H4 = H * LOCAL_STAT_NUM                 # 128

# Row layout of the 16-lane weight slab (all section starts 8-row aligned).
R_W29 = 0                               # (128,16) block_diag(w5..w8) @ w9
R_B29 = 128                             # (1,16)   [b5..b8] @ w9 + b9
R_MW11 = 136                            # (8,16)   memory @ w11
R_B11 = 144                             # (1,16)   b11
R_MEMT = 152                            # (16,8)   memory^T (lanes 8:16 zero)
R_W14 = 168                             # (32,4)   w14     (lanes 4:16 zero)
R_B14 = 200                             # (1,4)    b14     (lanes 4:16 zero)
SLAB16_ROWS = 208
SLAB16_LANES = 16


# ------------------------------- Pallas kernel ------------------------------
def gmn_ortho_kernel(
    acts_ref,    # (N, 64)        bf16  [x | nnl | nfl | diff], lanes 60:64 zero
    w128_ref,    # (65, 128)      bf16  rows 0:64 = block_diag(w1..w4), row 64 = bias
    w16_ref,     # (208, 16)      bf16  see R_* layout above
    out_ref,     # (N, 8)         f32   lanes 0:4 = logp, row0 lanes 4:8 = losses
):
    f32 = jnp.float32
    bf16 = jnp.bfloat16
    relu = lambda t: jnp.maximum(t, 0.0)

    # ---- fused lin1..lin4: one (16,64)@(64,128) block-diagonal matmul
    z1 = jnp.dot(acts_ref[...], w128_ref[0:IN_PAD, :], preferred_element_type=f32)
    z1 = relu(z1 + w128_ref[IN_PAD:IN_PAD + 1, :].astype(f32))               # (N,128)

    # ---- lin5..lin8 and lin9 folded host-side into one (128,16) matmul
    query = (jnp.dot(z1.astype(bf16), w16_ref[R_W29:R_W29 + H4, :],
                     preferred_element_type=f32)
             + w16_ref[R_B29:R_B29 + 1, :].astype(f32))                      # (N,16)

    memT = w16_ref[R_MEMT:R_MEMT + M, 0:K]                                   # (16,8) bf16
    memT_f32 = memT.astype(f32)

    # ---- ask_memory: scores (N,K), softmax over the lane axis K
    scores = jnp.dot(query.astype(bf16), memT, preferred_element_type=f32)   # (N,K)
    e = jnp.exp(scores - jnp.max(scores, axis=1, keepdims=True))
    att = e * pl.reciprocal(jnp.sum(e, axis=1, keepdims=True), approx=True)  # (N,K)

    mem_w = jnp.mean(att, axis=0, keepdims=True)                             # (1,K)
    mem_w = mem_w / jnp.sum(mem_w, axis=1, keepdims=True)   # exact (feeds log, off crit path)
    # entropy_loss = -sum(entr(p)) = sum(p*log(p)), with 0*log(0) := 0
    safe_w = jnp.where(mem_w > 0.0, mem_w, 1.0)
    ent_loss = jnp.sum(mem_w * jnp.log(safe_w))

    # ---- lin11 folded into the readout: value = att @ (memory @ w11) + b11
    value = (jnp.dot(att.astype(bf16), w16_ref[R_MW11:R_MW11 + K, :],
                     preferred_element_type=f32)
             + w16_ref[R_B11:R_B11 + 1, :].astype(f32))                      # (N,16)

    # ---- lin14 as two halves (relu distributes over the [query|value] concat)
    h = (jnp.dot(relu(query).astype(bf16), w16_ref[R_W14:R_W14 + M, 0:C],
                 preferred_element_type=f32)
         + jnp.dot(relu(value).astype(bf16), w16_ref[R_W14 + M:R_W14 + 2 * M, 0:C],
                   preferred_element_type=f32)
         + w16_ref[R_B14:R_B14 + 1, 0:C].astype(f32))                        # (N,C)

    # log_softmax over classes
    hs = h - jnp.max(h, axis=1, keepdims=True)
    logp = hs - jnp.log(jnp.sum(jnp.exp(hs), axis=1, keepdims=True))

    # ---- kpattern_distance: reuse `scores`, d^2 = |q|^2 + |m|^2 - 2 q.m
    q_sq = jnp.sum(query * query, axis=1, keepdims=True)                     # (N,1)
    m_sq = jnp.sum(memT_f32 * memT_f32, axis=0, keepdims=True)               # (1,K)
    d = jnp.sqrt(jnp.maximum(q_sq + m_sq - 2.0 * scores, 0.0))               # (N,K)
    kp_loss = jnp.mean(jnp.min(d, axis=0, keepdims=True))                    # min over nodes

    # ---- regu_loss = ||memory||_F (from memT; padded lanes are zero anyway)
    regu = jnp.sqrt(jnp.sum(memT_f32 * memT_f32))

    # ---- single fused output slab
    out_ref[:, 0:C] = logp
    lane = jax.lax.broadcasted_iota(jnp.int32, (N, C), 1)
    row = jax.lax.broadcasted_iota(jnp.int32, (N, C), 0)
    extra = jnp.where((row == 0) & (lane == 0), kp_loss,
              jnp.where((row == 0) & (lane == 1), ent_loss,
                jnp.where((row == 0) & (lane == 2), regu, 0.0)))
    out_ref[:, C:2 * C] = extra


# ------------------------------- wrapper -------------------------------------
def pack_inputs(x, nnl, nfl, diff, memory, params):
    """Host-side packing + algebraic folding: everything -> 3 bf16 VMEM slabs."""
    p = [np.asarray(t, np.float64) for t in params]
    (w1, b1, w2, b2, w3, b3, w4, b4,
     w5, b5, w6, b6, w7, b7, w8, b8,
     w9, b9, w11, b11, w14, b14) = p
    mem = np.asarray(memory, np.float64)

    # activations: [x | nnl | nfl | diff], lanes 60:64 zero (inert padding)
    acts = np.zeros((N, IN_PAD), np.float64)
    acts[:, 0:FEAT] = np.asarray(x, np.float64)
    acts[:, FEAT:FEAT + C] = np.asarray(nnl, np.float64)
    acts[:, FEAT + C:FEAT + C + C * FEAT] = np.asarray(nfl, np.float64)
    acts[:, FEAT + C + C * FEAT:IN_DIM] = np.asarray(diff, np.float64)

    # slab A (128 lanes): block-diag(w1..w4) with its concatenated bias row
    W1bd = np.zeros((IN_PAD, H4), np.float64)
    r = 0
    for k, (w, din) in enumerate(zip((w1, w2, w3, w4), (FEAT, C, C * FEAT, N))):
        W1bd[r:r + din, k * H:(k + 1) * H] = w
        r += din
    B1 = np.concatenate([b1, b2, b3, b4], axis=1)            # (1,128)
    slab128 = np.concatenate([W1bd, B1], axis=0)             # (65,128)

    # fold lin5..8 into lin9 (exact: no nonlinearity in between), in float64
    W2bd = np.zeros((H4, H4), np.float64)
    for k, w in enumerate((w5, w6, w7, w8)):
        W2bd[k * H:(k + 1) * H, k * H:(k + 1) * H] = w
    B2 = np.concatenate([b5, b6, b7, b8], axis=1)            # (1,128)
    W29 = W2bd @ w9                                          # (128,16)
    b29 = B2 @ w9 + b9                                       # (1,16)

    # fold lin11 into the attention readout
    memW11 = mem @ w11                                       # (8,16)

    # slab B (16 lanes), 8-row-aligned sections
    slab16 = np.zeros((SLAB16_ROWS, SLAB16_LANES), np.float64)
    slab16[R_W29:R_W29 + H4, :] = W29
    slab16[R_B29, :] = b29[0]
    slab16[R_MW11:R_MW11 + K, :] = memW11
    slab16[R_B11, :] = b11[0]
    slab16[R_MEMT:R_MEMT + M, 0:K] = mem.T
    slab16[R_W14:R_W14 + 2 * M, 0:C] = w14
    slab16[R_B14, 0:C] = b14[0]

    # MXU operands in bf16; accumulation stays f32 via preferred_element_type
    return [jnp.asarray(a, jnp.bfloat16) for a in (acts, slab128, slab16)]


def gmn_ortho_forward(packed_inputs):
    vmem = pl.BlockSpec(memory_space=pltpu.MemorySpace.VMEM)
    # No grid: total footprint is ~0.1 MiB, far under VMEM on v5e/v6e/v7x, and
    # any tiling/pipelining would only add per-step overhead at these sizes.
    # TODO(synk): for many-graph batches, add a leading "parallel" grid axis so
    # v7x's second TensorCore is used and the fixed launch/DMA cost amortizes.
    return pl.pallas_call(
        gmn_ortho_kernel,
        out_shape=jax.ShapeDtypeStruct((N, 2 * C), jnp.float32),
        in_specs=[vmem] * len(packed_inputs),
        out_specs=vmem,
    )(*packed_inputs)


# --------------------------- pure-JAX reference -------------------------------
def reference_forward(x, nnl, nfl, diff, memory, params):
    (w1, b1, w2, b2, w3, b3, w4, b4,
     w5, b5, w6, b6, w7, b7, w8, b8,
     w9, b9, w11, b11, w14, b14) = params
    relu = lambda t: jnp.maximum(t, 0.0)
    lin = lambda v, w, b: v @ w + b
    x_t = lin(relu(lin(x, w1, b1)), w5, b5)
    nn_t = lin(relu(lin(nnl, w2, b2)), w6, b6)
    nf_t = lin(relu(lin(nfl, w3, b3)), w7, b7)
    df_t = lin(relu(lin(diff, w4, b4)), w8, b8)
    query = lin(jnp.concatenate([x_t, nn_t, nf_t, df_t], axis=1), w9, b9)
    scores = memory @ query.T                               # (K, N)
    att = jax.nn.softmax(scores, axis=0)
    mem_w = att.mean(axis=1)
    mem_w = mem_w / mem_w.sum()
    safe = jnp.where(mem_w > 0, mem_w, 1.0)
    ent = jnp.sum(mem_w * jnp.log(safe))
    value = lin(att.T @ memory, w11, b11)
    h = lin(relu(jnp.concatenate([query, value], axis=1)), w14, b14)
    logp = jax.nn.log_softmax(h, axis=1)
    dvec = memory[:, None, :] - query[None, :, :]
    dist = jnp.sqrt(jnp.sum(dvec * dvec, axis=-1))          # (K, N)
    kp = jnp.mean(jnp.min(dist, axis=1))
    regu = jnp.sqrt(jnp.sum(memory * memory))
    return logp, kp, ent, regu


# --------------------------- deterministic init -------------------------------
def init_params(key):
    # (in_features, out_features) for lin1..lin9, lin11, lin14 (lin10/12/13 unused)
    dims = [
        (FEAT, H), (C, H), (C * FEAT, H), (N, H),
        (H, H), (H, H), (H, H), (H, H),
        (H * LOCAL_STAT_NUM, M), (M, M), (2 * M, C),
    ]
    params = []
    for d_in, d_out in dims:
        key, k1, k2 = jax.random.split(key, 3)
        w = jax.random.normal(k1, (d_in, d_out), jnp.float32) * (1.0 / np.sqrt(d_in))
        b = jax.random.normal(k2, (1, d_out), jnp.float32) * 0.01
        params += [w, b]
    return params, key


def precompute_neighbor_stats(x_np, edge_index, y_pseudo):
    """Numpy reproduction of num_neighbor_classes (scatter sum / mean)."""
    nnl = np.zeros((N, C), np.float32)
    nfl = np.zeros((N, C * FEAT), np.float32)
    for i in range(N):
        neigh = edge_index[1][edge_index[0] == i]
        cls = y_pseudo[neigh]
        size = int(cls.max()) + 1
        counts = np.zeros(size, np.float32)
        feats = np.zeros((size, FEAT), np.float32)
        for j, c in zip(neigh, cls):
            counts[c] += 1.0
            feats[c] += x_np[j]
        feats = feats / np.maximum(counts[:, None], 1.0)   # scatter-mean (0 where empty)
        nnl[i, :size] = counts
        nfl[i, : size * FEAT] = feats.reshape(-1)
    return nnl, nfl


def precompute_diffusion(edge_index, alpha):
    """GDC.diffusion_matrix_exact(ppr): alpha * inv(I + (alpha-1) * A)."""
    A = np.zeros((N, N), np.float32)
    A[edge_index[0], edge_index[1]] = 1.0
    mat = np.eye(N, dtype=np.float32) + (alpha - 1.0) * A
    return (alpha * np.linalg.inv(mat)).astype(np.float32)


# ------------------------------------ main ------------------------------------
if __name__ == "__main__":
    key = jax.random.PRNGKey(0)

    # synthetic graph: bidirectional ring so every node has neighbors
    src = np.concatenate([np.arange(N), np.arange(N)])
    dst = np.concatenate([(np.arange(N) + 1) % N, (np.arange(N) - 1) % N])
    edge_index = np.stack([src, dst]).astype(np.int64)          # (2, E)

    key, kx, ky, km = jax.random.split(key, 4)
    x = jax.random.normal(kx, (N, FEAT), jnp.float32)
    y_pseudo = np.asarray(jax.random.randint(ky, (N,), 0, C))

    # memory (K, M): xavier-uniform-style deterministic init
    bound = float(np.sqrt(6.0 / (K + M)))
    memory = jax.random.uniform(km, (K, M), jnp.float32, minval=-bound, maxval=bound)

    # __init__ precomputed buffers (host-side glue, outside the kernel)
    x_np = np.asarray(x)
    nnl_np, nfl_np = precompute_neighbor_stats(x_np, edge_index, y_pseudo)
    diff_np = precompute_diffusion(edge_index, PPR_ALPHA)
    nnl = jnp.asarray(nnl_np)
    nfl = jnp.asarray(nfl_np)
    diff = jnp.asarray(diff_np)

    params, key = init_params(key)

    # TODO(synk): dropout is implemented as identity (eval mode); stochastic
    # training-mode dropout has no deterministic reference to match.
    packed = pack_inputs(x, nnl, nfl, diff, memory, params)
    out = jax.block_until_ready(gmn_ortho_forward(packed))
    out_np = np.asarray(out)
    logp = out_np[:, 0:C]
    kp_loss, ent_loss, regu_loss = out_np[0, C], out_np[0, C + 1], out_np[0, C + 2]

    # cross-check against a plain-JAX, per-layer (unfolded, f32) reference
    ref_logp, ref_kp, ref_ent, ref_regu = reference_forward(
        x, nnl, nfl, diff, memory, params)

    assert out_np.shape == (N, 2 * C)
    assert np.all(np.isfinite(out_np))
    # bf16 MXU operands -> allow a small relative margin on the scalar losses
    tol = lambda r: 5e-2 + 2e-2 * abs(float(r))
    assert np.max(np.abs(logp - np.asarray(ref_logp))) < 5e-2
    assert abs(float(kp_loss) - float(ref_kp)) < tol(ref_kp)
    assert abs(float(ent_loss) - float(ref_ent)) < tol(ref_ent)
    assert abs(float(regu_loss) - float(ref_regu)) < tol(ref_regu)
    print("KERNEL_OK")
</pallas_src>

<mosaic_0001>
module attributes {stable_mosaic.version = 11 : i64} {
  func.func @gmn_ortho_kernel(%arg0: memref<16x64xbf16, #tpu.memory_space<vmem>>, %arg1: memref<65x128xbf16, #tpu.memory_space<vmem>>, %arg2: memref<208x16xbf16, #tpu.memory_space<vmem>>, %arg3: memref<16x8xf32, #tpu.memory_space<vmem>>) attributes {dimension_semantics = [], scalar_prefetch = 0 : i64, scratch_operands = 0 : i64, tpu.core_type = #tpu.core_type<tc>} {
    %c0 = arith.constant 0 : index
    %c0_0 = arith.constant 0 : index
    %0 = vector.load %arg0[%c0, %c0_0] : memref<16x64xbf16, #tpu.memory_space<vmem>>, vector<16x64xbf16>
    %c0_1 = arith.constant 0 : index
    %c0_2 = arith.constant 0 : index
    %1 = vector.load %arg1[%c0_1, %c0_2] : memref<65x128xbf16, #tpu.memory_space<vmem>>, vector<64x128xbf16>
    %cst = arith.constant dense<0.000000e+00> : vector<16x128xf32>
    %2 = tpu.matmul %0, %1, %cst {dimension_numbers = #tpu.dot_dimension_numbers<[1], [0], [0], [1], [0, 0, 1, 1], [], []>} : vector<16x64xbf16>, vector<64x128xbf16>, vector<16x128xf32> -> vector<16x128xf32>
    %c64 = arith.constant 64 : index
    %c0_3 = arith.constant 0 : index
    %3 = vector.load %arg1[%c64, %c0_3] : memref<65x128xbf16, #tpu.memory_space<vmem>>, vector<1x128xbf16>
    %4 = arith.extf %3 : vector<1x128xbf16> to vector<1x128xf32>
    %5 = vector.broadcast %4 : vector<1x128xf32> to vector<16x128xf32>
    %6 = arith.addf %2, %5 : vector<16x128xf32>
    %cst_4 = arith.constant 0.000000e+00 : f32
    %7 = vector.broadcast %cst_4 : f32 to vector<16x128xf32>
    %8 = arith.maximumf %6, %7 : vector<16x128xf32>
    %9 = arith.truncf %8 : vector<16x128xf32> to vector<16x128xbf16>
    %c0_5 = arith.constant 0 : index
    %c0_6 = arith.constant 0 : index
    %10 = vector.load %arg2[%c0_5, %c0_6] : memref<208x16xbf16, #tpu.memory_space<vmem>>, vector<128x16xbf16>
    %cst_7 = arith.constant dense<0.000000e+00> : vector<16x16xf32>
    %11 = tpu.matmul %9, %10, %cst_7 {dimension_numbers = #tpu.dot_dimension_numbers<[1], [0], [0], [1], [0, 0, 1, 1], [], []>} : vector<16x128xbf16>, vector<128x16xbf16>, vector<16x16xf32> -> vector<16x16xf32>
    %c128 = arith.constant 128 : index
    %c0_8 = arith.constant 0 : index
    %12 = vector.load %arg2[%c128, %c0_8] : memref<208x16xbf16, #tpu.memory_space<vmem>>, vector<1x16xbf16>
    %13 = arith.extf %12 : vector<1x16xbf16> to vector<1x16xf32>
    %14 = vector.broadcast %13 : vector<1x16xf32> to vector<16x16xf32>
    %15 = arith.addf %11, %14 : vector<16x16xf32>
    %c152 = arith.constant 152 : index
    %c0_9 = arith.constant 0 : index
    %16 = vector.load %arg2[%c152, %c0_9] : memref<208x16xbf16, #tpu.memory_space<vmem>>, vector<16x8xbf16>
    %17 = arith.extf %16 : vector<16x8xbf16> to vector<16x8xf32>
    %18 = arith.truncf %15 : vector<16x16xf32> to vector<16x16xbf16>
    %cst_10 = arith.constant dense<0.000000e+00> : vector<16x8xf32>
    %19 = tpu.matmul %18, %16, %cst_10 {dimension_numbers = #tpu.dot_dimension_numbers<[1], [0], [0], [1], [0, 0, 1, 1], [], []>} : vector<16x16xbf16>, vector<16x8xbf16>, vector<16x8xf32> -> vector<16x8xf32>
    %cst_11 = arith.constant dense<0xFF800000> : vector<16xf32>
    %20 = vector.multi_reduction <maximumf>, %19, %cst_11 [1] : vector<16x8xf32> to vector<16xf32>
    %21 = vector.shape_cast %20 : vector<16xf32> to vector<16x1xf32>
    %22 = vector.broadcast %21 : vector<16x1xf32> to vector<16x8xf32>
    %23 = arith.subf %19, %22 : vector<16x8xf32>
    %24 = math.exp %23 : vector<16x8xf32>
    %cst_12 = arith.constant dense<0.000000e+00> : vector<16xf32>
    %25 = vector.multi_reduction <add>, %24, %cst_12 [1] : vector<16x8xf32> to vector<16xf32>
    %26 = vector.shape_cast %25 : vector<16xf32> to vector<16x1xf32>
    %27 = tpu.reciprocal %26 {approx = true} : vector<16x1xf32> -> vector<16x1xf32>
    %28 = vector.broadcast %27 : vector<16x1xf32> to vector<16x8xf32>
    %29 = arith.mulf %24, %28 : vector<16x8xf32>
    %cst_13 = arith.constant dense<0.000000e+00> : vector<8xf32>
    %30 = vector.multi_reduction <add>, %29, %cst_13 [0] : vector<16x8xf32> to vector<8xf32>
    %31 = vector.shape_cast %30 : vector<8xf32> to vector<1x8xf32>
    %cst_14 = arith.constant 1.600000e+01 : f32
    %32 = vector.broadcast %cst_14 : f32 to vector<1x8xf32>
    %33 = arith.divf %31, %32 : vector<1x8xf32>
    %cst_15 = arith.constant dense<0.000000e+00> : vector<1xf32>
    %34 = vector.multi_reduction <add>, %33, %cst_15 [1] : vector<1x8xf32> to vector<1xf32>
    %35 = vector.shape_cast %34 : vector<1xf32> to vector<1x1xf32>
    %36 = vector.broadcast %35 : vector<1x1xf32> to vector<1x8xf32>
    %37 = arith.divf %33, %36 : vector<1x8xf32>
    %cst_16 = arith.constant 0.000000e+00 : f32
    %38 = vector.broadcast %cst_16 : f32 to vector<1x8xf32>
    %39 = arith.cmpf ogt, %37, %38 : vector<1x8xf32>
    %cst_17 = arith.constant 1.000000e+00 : f32
    %40 = vector.broadcast %cst_17 : f32 to vector<1x8xf32>
    %41 = arith.select %39, %37, %40 : vector<1x8xi1>, vector<1x8xf32>
    %42 = math.log %41 : vector<1x8xf32>
    %43 = arith.mulf %37, %42 : vector<1x8xf32>
    %44 = vector.shape_cast %43 : vector<1x8xf32> to vector<1x1x8xf32>
    %cst_18 = arith.constant dense<0.000000e+00> : vector<1xf32>
    %45 = vector.multi_reduction <add>, %44, %cst_18 [1, 2] : vector<1x1x8xf32> to vector<1xf32>
    %46 = vector.shape_cast %45 : vector<1xf32> to vector<1x1x1xf32>
    %47 = vector.extract %46[0, 0, 0] : f32 from vector<1x1x1xf32>
    %48 = arith.truncf %29 : vector<16x8xf32> to vector<16x8xbf16>
    %c136 = arith.constant 136 : index
    %c0_19 = arith.constant 0 : index
    %49 = vector.load %arg2[%c136, %c0_19] : memref<208x16xbf16, #tpu.memory_space<vmem>>, vector<8x16xbf16>
    %cst_20 = arith.constant dense<0.000000e+00> : vector<16x16xf32>
    %50 = tpu.matmul %48, %49, %cst_20 {dimension_numbers = #tpu.dot_dimension_numbers<[1], [0], [0], [1], [0, 0, 1, 1], [], []>} : vector<16x8xbf16>, vector<8x16xbf16>, vector<16x16xf32> -> vector<16x16xf32>
    %c144 = arith.constant 144 : index
    %c0_21 = arith.constant 0 : index
    %51 = vector.load %arg2[%c144, %c0_21] : memref<208x16xbf16, #tpu.memory_space<vmem>>, vector<1x16xbf16>
    %52 = arith.extf %51 : vector<1x16xbf16> to vector<1x16xf32>
    %53 = vector.broadcast %52 : vector<1x16xf32> to vector<16x16xf32>
    %54 = arith.addf %50, %53 : vector<16x16xf32>
    %cst_22 = arith.constant 0.000000e+00 : f32
    %55 = vector.broadcast %cst_22 : f32 to vector<16x16xf32>
    %56 = arith.maximumf %15, %55 : vector<16x16xf32>
    %57 = arith.truncf %56 : vector<16x16xf32> to vector<16x16xbf16>
    %c168 = arith.constant 168 : index
    %c0_23 = arith.constant 0 : index
    %58 = vector.load %arg2[%c168, %c0_23] : memref<208x16xbf16, #tpu.memory_space<vmem>>, vector<16x4xbf16>
    %cst_24 = arith.constant dense<0.000000e+00> : vector<16x4xf32>
    %59 = tpu.matmul %57, %58, %cst_24 {dimension_numbers = #tpu.dot_dimension_numbers<[1], [0], [0], [1], [0, 0, 1, 1], [], []>} : vector<16x16xbf16>, vector<16x4xbf16>, vector<16x4xf32> -> vector<16x4xf32>
    %cst_25 = arith.constant 0.000000e+00 : f32
    %60 = vector.broadcast %cst_25 : f32 to vector<16x16xf32>
    %61 = arith.maximumf %54, %60 : vector<16x16xf32>
    %62 = arith.truncf %61 : vector<16x16xf32> to vector<16x16xbf16>
    %c184 = arith.constant 184 : index
    %c0_26 = arith.constant 0 : index
    %63 = vector.load %arg2[%c184, %c0_26] : memref<208x16xbf16, #tpu.memory_space<vmem>>, vector<16x4xbf16>
    %cst_27 = arith.constant dense<0.000000e+00> : vector<16x4xf32>
    %64 = tpu.matmul %62, %63, %cst_27 {dimension_numbers = #tpu.dot_dimension_numbers<[1], [0], [0], [1], [0, 0, 1, 1], [], []>} : vector<16x16xbf16>, vector<16x4xbf16>, vector<16x4xf32> -> vector<16x4xf32>
    %65 = arith.addf %59, %64 : vector<16x4xf32>
    %c200 = arith.constant 200 : index
    %c0_28 = arith.constant 0 : index
    %66 = vector.load %arg2[%c200, %c0_28] : memref<208x16xbf16, #tpu.memory_space<vmem>>, vector<1x4xbf16>
    %67 = arith.extf %66 : vector<1x4xbf16> to vector<1x4xf32>
    %68 = vector.broadcast %67 : vector<1x4xf32> to vector<16x4xf32>
    %69 = arith.addf %65, %68 : vector<16x4xf32>
    %cst_29 = arith.constant dense<0xFF800000> : vector<16xf32>
    %70 = vector.multi_reduction <maximumf>, %69, %cst_29 [1] : vector<16x4xf32> to vector<16xf32>
    %71 = vector.shape_cast %70 : vector<16xf32> to vector<16x1xf32>
    %72 = vector.broadcast %71 : vector<16x1xf32> to vector<16x4xf32>
    %73 = arith.subf %69, %72 : vector<16x4xf32>
    %74 = math.exp %73 : vector<16x4xf32>
    %cst_30 = arith.constant dense<0.000000e+00> : vector<16xf32>
    %75 = vector.multi_reduction <add>, %74, %cst_30 [1] : vector<16x4xf32> to vector<16xf32>
    %76 = vector.shape_cast %75 : vector<16xf32> to vector<16x1xf32>
    %77 = math.log %76 : vector<16x1xf32>
    %78 = vector.broadcast %77 : vector<16x1xf32> to vector<16x4xf32>
    %79 = arith.subf %73, %78 : vector<16x4xf32>
    %80 = arith.mulf %15, %15 : vector<16x16xf32>
    %cst_31 = arith.constant dense<0.000000e+00> : vector<16xf32>
    %81 = vector.multi_reduction <add>, %80, %cst_31 [1] : vector<16x16xf32> to vector<16xf32>
    %82 = vector.shape_cast %81 : vector<16xf32> to vector<16x1xf32>
    %83 = arith.mulf %17, %17 : vector<16x8xf32>
    %cst_32 = arith.constant dense<0.000000e+00> : vector<8xf32>
    %84 = vector.multi_reduction <add>, %83, %cst_32 [0] : vector<16x8xf32> to vector<8xf32>
    %85 = vector.shape_cast %84 : vector<8xf32> to vector<1x8xf32>
    %86 = vector.broadcast %82 : vector<16x1xf32> to vector<16x8xf32>
    %87 = vector.broadcast %85 : vector<1x8xf32> to vector<16x8xf32>
    %88 = arith.addf %86, %87 : vector<16x8xf32>
    %cst_33 = arith.constant 2.000000e+00 : f32
    %89 = vector.broadcast %cst_33 : f32 to vector<16x8xf32>
    %90 = arith.mulf %89, %19 : vector<16x8xf32>
    %91 = arith.subf %88, %90 : vector<16x8xf32>
    %cst_34 = arith.constant 0.000000e+00 : f32
    %92 = vector.broadcast %cst_34 : f32 to vector<16x8xf32>
    %93 = arith.maximumf %91, %92 : vector<16x8xf32>
    %94 = math.sqrt %93 : vector<16x8xf32>
    %cst_35 = arith.constant dense<0x7F800000> : vector<8xf32>
    %95 = vector.multi_reduction <minimumf>, %94, %cst_35 [0] : vector<16x8xf32> to vector<8xf32>
    %96 = vector.shape_cast %95 : vector<8xf32> to vector<1x8xf32>
    %97 = vector.shape_cast %96 : vector<1x8xf32> to vector<1x1x8xf32>
    %cst_36 = arith.constant dense<0.000000e+00> : vector<1xf32>
    %98 = vector.multi_reduction <add>, %97, %cst_36 [1, 2] : vector<1x1x8xf32> to vector<1xf32>
    %99 = vector.shape_cast %98 : vector<1xf32> to vector<1x1x1xf32>
    %100 = vector.extract %99[0, 0, 0] : f32 from vector<1x1x1xf32>
    %cst_37 = arith.constant 8.000000e+00 : f32
    %101 = arith.divf %100, %cst_37 : f32
    %102 = arith.mulf %17, %17 : vector<16x8xf32>
    %103 = vector.shape_cast %102 : vector<16x8xf32> to vector<1x16x8xf32>
    %cst_38 = arith.constant dense<0.000000e+00> : vector<1xf32>
    %104 = vector.multi_reduction <add>, %103, %cst_38 [1, 2] : vector<1x16x8xf32> to vector<1xf32>
    %105 = vector.shape_cast %104 : vector<1xf32> to vector<1x1x1xf32>
    %106 = vector.extract %105[0, 0, 0] : f32 from vector<1x1x1xf32>
    %107 = math.sqrt %106 : f32
    %c0_39 = arith.constant 0 : index
    %c0_40 = arith.constant 0 : index
    %108 = vector.load %arg3[%c0_39, %c0_40] : memref<16x8xf32, #tpu.memory_space<vmem>>, vector<16x4xf32>
    tpu.vector_store %arg3[%c0_39, %c0_40], %79 {strides = array<i32>} : memref<16x8xf32, #tpu.memory_space<vmem>>, vector<16x4xf32>,
    %109 = tpu.iota {dimensions = array<i32: 1>} : vector<16x4xi32>
    %110 = tpu.iota {dimensions = array<i32: 0>} : vector<16x4xi32>
    %c0_i32 = arith.constant 0 : i32
    %111 = vector.broadcast %c0_i32 : i32 to vector<16x4xi32>
    %112 = arith.cmpi eq, %110, %111 : vector<16x4xi32>
    %c0_i32_41 = arith.constant 0 : i32
    %113 = vector.broadcast %c0_i32_41 : i32 to vector<16x4xi32>
    %114 = arith.cmpi eq, %109, %113 : vector<16x4xi32>
    %115 = arith.andi %112, %114 : vector<16x4xi1>
    %c0_i32_42 = arith.constant 0 : i32
    %116 = vector.broadcast %c0_i32_42 : i32 to vector<16x4xi32>
    %117 = arith.cmpi eq, %110, %116 : vector<16x4xi32>
    %c1_i32 = arith.constant 1 : i32
    %118 = vector.broadcast %c1_i32 : i32 to vector<16x4xi32>
    %119 = arith.cmpi eq, %109, %118 : vector<16x4xi32>
    %120 = arith.andi %117, %119 : vector<16x4xi1>
    %c0_i32_43 = arith.constant 0 : i32
    %121 = vector.broadcast %c0_i32_43 : i32 to vector<16x4xi32>
    %122 = arith.cmpi eq, %110, %121 : vector<16x4xi32>
    %c2_i32 = arith.constant 2 : i32
    %123 = vector.broadcast %c2_i32 : i32 to vector<16x4xi32>
    %124 = arith.cmpi eq, %109, %123 : vector<16x4xi32>
    %125 = arith.andi %122, %124 : vector<16x4xi1>
    %cst_44 = arith.constant 0.000000e+00 : f32
    %126 = vector.broadcast %107 : f32 to vector<16x4xf32>
    %127 = vector.broadcast %cst_44 : f32 to vector<16x4xf32>
    %128 = arith.select %125, %126, %127 : vector<16x4xi1>, vector<16x4xf32>
    %129 = vector.broadcast %47 : f32 to vector<16x4xf32>
    %130 = arith.select %120, %129, %128 : vector<16x4xi1>, vector<16x4xf32>
    %131 = vector.broadcast %101 : f32 to vector<16x4xf32>
    %132 = arith.select %115, %131, %130 : vector<16x4xi1>, vector<16x4xf32>
    %c0_45 = arith.constant 0 : index
    %c4 = arith.constant 4 : index
    %133 = vector.load %arg3[%c0_45, %c4] : memref<16x8xf32, #tpu.memory_space<vmem>>, vector<16x4xf32>
    tpu.vector_store %arg3[%c0_45, %c4], %132 {strides = array<i32>} : memref<16x8xf32, #tpu.memory_space<vmem>>, vector<16x4xf32>,
    return
  }
}

</mosaic_0001>

<bundles_post_ra>
// kernel: tpu_custom_call.1
= control target key start
LH: loop header
LB: loop body
LE: loop exit
PB: predicated region body
PF: predicated region fallthrough
CT: control target
= control target key end

     0   :  { %v805_v0 = vmov 0.0   ;;  %vm806_vm0 = vmmov 0   ;;  %vm60_vm1 = vcmask 523264   ;;  %v27_v15 = vlaneseq  ;;  %s807_s29 = smov 4   ;;  %s997_s1 = inlined_call_operand.vmem [shape: bf16[65,128], index: 1, kind: input, shape index: {}]   ;;  %s998_s2 = inlined_call_operand.vmem [shape: bf16[208,16], index: 2, kind: input, shape index: {}]   ;;  %s999_s0 = inlined_call_operand.vmem [shape: bf16[16,64], index: 0, kind: input, shape index: {}]   ;;  %s1000_s3 = inlined_call_operand.vmem [shape: f32[16,8], index: 3, kind: output, shape index: {}]  }
   0x1   :  { %695 = vmatprep.subr.bf16.mxu0 %v805_v0  ;;  %v762_v1 = vld [vmem:[%s997_s1] sm:$0xff]   ;;  %703 = vmatprep.mubr.msk.bf16.mxu0 %vm806_vm0, %v805_v0  ;;  %v763_v2 = vld [vmem:[%s997_s1 + $0x8] sm:$0xff]   ;;  %v764_v4 = vld [vmem:[%s997_s1 + $0x10] sm:$0xff]   ;;  %vm230_vm2 = vcmask 130048   ;;  %vm275_vm3 = vcmask 64512   ;;  %vm341_vm4 = vcmask 1043456  }
   0x2   :  { %707 = vmatprep.subr.bf16.mxu1 %v805_v0  ;;  %723 = vmatprep.mubr.msk.bf16.mxu1 %vm806_vm0, %v805_v0  ;;  %v767_v3 = vld [vmem:[%s998_s2] sm:$0xff]   ;;  %v768_v5 = vld [vmem:[%s998_s2 + $0x8] sm:$0xff]   ;;  %v765_v6 = vld [vmem:[%s997_s1 + $0x18] sm:$0xff]   ;;  %v895_v16 = vshrl.u32 %v27_v15, 7  ;;  %vm319_vm9 = vcmask 57344   ;;  %vm504_vm13 = vcmask 31744  }
   0x3   :  { %696 = vmatpush3.bf16.msra.mxu0 %v762_v1  ;;  %708 = vmatpush3.bf16.msra.mxu1 %v767_v3  ;;  %v766_v7 = vld [vmem:[%s999_s0] sm:$0xff]   ;;  %v769_v8 = vld [vmem:[%s998_s2 + $0x10] sm:$0xff]   ;;  %v770_v9 = vld [vmem:[%s998_s2 + $0x18] sm:$0xff]  }
   0x4   :  { %697 = vmatprep.subr.bf16.mxu0 %v805_v0  ;;  %709 = vmatprep.subr.bf16.mxu1 %v805_v0  ;;  %v771_v10 = vld [vmem:[%s998_s2 + $0x20] sm:$0xff]   ;;  %v772_v11 = vld [vmem:[%s998_s2 + $0x28] sm:$0xff]   ;;  %v773_v12 = vld [vmem:[%s998_s2 + $0x30] sm:$0xff]   ;;  %v901_v19 = vsub.s32 0, %v895_v16  ;;  %vm617_vm14 = vcmp.eq.s32.totalorder %v895_v16, 0 }
   0x5   :  { %v774_v13 = vld [vmem:[%s998_s2 + $0x38] sm:$0xff]   ;;  %v890_v14 = vld [vmem:[%s998_s2 + $0x4c] sm:$0xff]   ;;  %v25_v17 = vld [vmem:[%s997_s1 + $0x20] sm:$0x1] }
   0x6   :  { %v26_v18 = vunpack.c.l.bf16 %v25_v17  ;;  %v776_v30 = vld [vmem:[%s998_s2 + $0x54] sm:$0xff]   ;;  %v124_v31 = vld [vmem:[%s998_s2 + $0x40] sm:$0x1] }
   0x7   :  { %698 = vmatpush3.bf16.msra.mxu0 %v763_v2  ;;  %710 = vmatpush3.bf16.msra.mxu1 %v768_v5  ;;  %v125_v32 = vunpack.c.l.bf16 %v124_v31  ;;  %v331_v5 = vld [vmem:[%s998_s2 + $0x44] sm:$0xf] }
   0x8   :  { %699 = vmatprep.subr.bf16.mxu0 %v805_v0  ;;  %711 = vmatprep.subr.bf16.mxu1 %v805_v0  ;;  %v30_v20 = vrot.slane %v26_v18, %v901_v19 }
   0x9   :  { %v129_v33 = vrot.slane %v125_v32, %v901_v19 }
   0xb   :  { %700 = vmatpush3.bf16.msra.mxu0 %v764_v4  ;;  %712 = vmatpush3.bf16.msra.mxu1 %v769_v8  ;;  %v222_v8 = vunpack.c.h.bf16 %v890_v14 }
   0xc   :  { %701 = vmatprep.subr.bf16.mxu0 %v805_v0  ;;  %713 = vmatprep.subr.bf16.mxu1 %v805_v0 }
   0xf   :  { %702 = vmatpush3.bf16.msra.mxu0 %v765_v6  ;;  %714 = vmatpush3.bf16.msra.mxu1 %v770_v9  ;;  %v343_v6 = vsel %vm341_vm4, %v331_v5, 0 }
  0x10   :  { %727 = vmatprep.subr.bf16.mxu0 %v805_v0  ;;  %715 = vmatprep.subr.bf16.mxu1 %v805_v0 }
  0x12   :  { %704 = vmatmul.mubr.msk.bf16.vlgmr.msra.gmra.mrb[0].mxu0 %vm60_vm1, %v766_v7  ;;  %v221_v7 = vunpack.c.l.bf16 %v890_v14 }
  0x13   :  { %729 = vmatprep.mubr.msk.bf16.mxu0 %vm806_vm0, %v805_v0  ;;  %716 = vmatpush3.bf16.msra.mxu1 %v771_v10  ;;  %v538_v10 = vmul.f32 %v222_v8, %v222_v8 }
  0x14   :  { %717 = vmatprep.subr.bf16.mxu1 %v805_v0  ;;  %728 = vmatpush3.bf16.msra.mxu0 %v890_v14  ;;  %v537_v9 = vmul.f32 %v221_v7, %v221_v7 }
  0x15   :  { %733 = vmatprep.subr.bf16.mxu0 %v805_v0 }
  0x17   :  { %718 = vmatpush3.bf16.msra.mxu1 %v772_v11  ;;  %v539_v11 = vsel %vm275_vm3, %v537_v9, 0.0 }
  0x18   :  { %719 = vmatprep.subr.bf16.mxu1 %v805_v0 }
  0x1b   :  { %720 = vmatpush3.bf16.msra.mxu1 %v773_v12  ;;  %v540_v12 = vsel %vm275_vm3, %v538_v10, 0.0  ;;  %v777_v10 = vld [vmem:[%s998_s2 + $0x5c] sm:$0xff]  }
  0x1c   :  { %721 = vmatprep.subr.bf16.mxu1 %v805_v0 }
  0x1f   :  { %722 = vmatpush3.bf16.msra.mxu1 %v774_v13  ;;  %v935_v13 = vadd.f32 %v540_v12, %v539_v11 }
  0x20   :  { %745 = vmatprep.subr.bf16.mxu1 %v805_v0 }
  0x21   :  { %v542_v17 = vrot.slane %v935_v13, 4 }
  0x23   :  { %v543_v18 = vadd.f32 %v542_v17, %v935_v13 }
  0xe5   :  { %v98_v21 = vpop.f32.mrb[0].mxu0 }
  0xe6   :  { %v99_v22 = vadd.f32 %v98_v21, %v30_v20  ;;  %v705_v23 = vpop.f32.mrb[1].mxu0 }
  0xe7   :  { %v101_v24 = vpop.f32.mrb[2].mxu0 }
  0xe8   :  { %v102_v25 = vadd.f32 %v101_v24, %v30_v20  ;;  %v706_v26 = vpop.f32.mrb[3].mxu0  ;;  %v105_v27 = vmax.f32 %v99_v22, 0.0  ;;  %v544_v20 = vrot.slane %v543_v18, 2 }
  0xea   :  { %v106_v28 = vmax.f32 %v102_v25, 0.0  ;;  %v545_v21 = vadd.f32 %v544_v20, %v543_v18 }
  0xec   :  { %v107_v29 = vpack.c.bf16 %v106_v28, %v105_v27  ;;  %v546_v22 = vrot.slane %v545_v21, 1 }
  0xee   :  { %724 = vmatmul.mubr.bf16.vlgmr.msra.gmra.mrb[0].mxu1 %v107_v29  ;;  %v547_v23 = vadd.f32 %v546_v22, %v545_v21 }
  0xef   :  { %747 = vmatprep.mubr.msk.bf16.mxu1 %vm806_vm0, %v805_v0  ;;  %746 = vmatpush3.bf16.msra.mxu1 %v776_v30 }
 0x1c1   :  { %v212_v34 = vpop.f32.mrb[0].mxu1 }
 0x1c2   :  { %v213_v35 = vadd.f32 %v212_v34, %v129_v33  ;;  %v725_v36 = vpop.f32.mrb[1].mxu1 }
 0x1c3   :  { %v215_v37 = vpop.f32.mrb[2].mxu1 }
 0x1c4   :  { %v216_v38 = vadd.f32 %v215_v37, %v129_v33  ;;  %v726_v39 = vpop.f32.mrb[3].mxu1  ;;  %v386_v40 = vmax.f32 %v213_v35, 0.0  ;;  %v529_v54 = vmul.f32 %v213_v35, %v213_v35 }
 0x1c6   :  { %v223_v41 = vpack.c.bf16 %v216_v38, %v213_v35  ;;  %v387_v42 = vmax.f32 %v216_v38, 0.0  ;;  %v531_v55 = vsel %vm230_vm2, %v529_v54, 0.0  ;;  %v530_v3 = vmul.f32 %v216_v38, %v216_v38 }
 0x1c8   :  { %v388_v43 = vpack.c.bf16 %v387_v42, %v386_v40  ;;  %730 = vmatmul.mubr.msk.bf16.vlgmr.msra.gmra.mrb[4].mxu0 %vm230_vm2, %v223_v41  ;;  %v534_v4 = vsel %vm230_vm2, %v530_v3, 0.0 }
 0x1c9   :  { %735 = vmatprep.mubr.msk.bf16.mxu0 %vm806_vm0, %v805_v0  ;;  %734 = vmatpush3.bf16.msra.mxu0 %v343_v6 }
 0x1ca   :  { %748 = vmatmul.mubr.msk.bf16.vlgmr.msra.gmra.mrb[4].mxu1 %vm230_vm2, %v388_v43  ;;  %739 = vmatprep.subr.bf16.mxu0 %v805_v0 }
 0x29b   :  { %v268_v44 = vpop.f32.mrb[4].mxu0 }
 0x29c   :  { %v731_v45 = vpop.f32.mrb[5].mxu0  ;;  %v276_v46 = vsel %vm275_vm3, %v268_v44, -inf  ;;  %v550_v26 = vmul.f32 2.0, %v268_v44 }
 0x29d   :  { %v918_v47 = vpop.f32.mrb[4].mxu1  ;;  %277 = vmax.xlane.f32.xlu0 %v276_v46  ;;  %v271_v48 = vpop.f32.mrb[6].mxu0 }
 0x29e   :  { %v732_v49 = vpop.f32.mrb[7].mxu0  ;;  %v749_v50 = vpop.f32.mrb[5].mxu1  ;;  %v279_v53 = vsel %vm275_vm3, %v271_v48, -inf  ;;  %v551_v31 = vmul.f32 2.0, %v271_v48 }
 0x29f   :  { %v920_v51 = vpop.f32.mrb[6].mxu1 }
 0x2a0   :  { %v750_v52 = vpop.f32.mrb[7].mxu1 }
 0x2a1   :  { %280 = vmax.xlane.f32.xlu0 %v279_v53 }
 0x2a5   :  { %532 = vadd.xlane.f32.xlu0 %v531_v55 }
 0x32a   :  { %v278_v56 = vpop.xlane.xlu0 %277 }
 0x32b   :  { %v282_v57 = vsub.f32 %v268_v44, %v278_v56 }
 0x32d   :  { %v284_v58 = vmul.f32 1.442695, %v282_v57 }
 0x32e   :  { %v281_v59 = vpop.xlane.xlu0 %280 }
 0x32f   :  { %779 = vpow2.f32 %v284_v58  ;;  %v283_v60 = vsub.f32 %v271_v48, %v281_v59 }
 0x331   :  { %v286_v61 = vmul.f32 1.442695, %v283_v60 }
 0x332   :  { %v533_v24 = vpop.xlane.xlu0 %532 }
 0x333   :  { %781 = vpow2.f32 %v286_v61  ;;  %v548_v25 = vadd.f32 %v547_v23, %v533_v24  ;;  %v332_v24 = vld [vmem:[%s998_s2 + $0x48] sm:$0x1] }
 0x335   :  { %v552_v14 = vsub.f32 %v548_v25, %v550_v26  ;;  %v333_v25 = vunpack.c.l.bf16 %v332_v24 }
 0x337   :  { %v554_v28 = vmax.f32 %v552_v14, 0.0  ;;  %v337_v26 = vrot.slane %v333_v25, %v901_v19 }
 0x339   :  { %v780_v62 = vpop.eup %779  ;;  %vm558_vm5 = vcmp.eq.f32.partialorder %v554_v28, inf  ;;  %v561_v52 = vand.u32 2147483648, %v554_v28  ;;  %vm560_vm6 = vcmp.eq.f32.partialorder %v554_v28, 0.0 }
 0x33a   :  { %v288_v63 = vsel %vm275_vm3, %v780_v62, 0.0 }
 0x33b   :  { %289 = vadd.xlane.f32.xlu1 %v288_v63 }
 0x33d   :  { %v782_v1 = vpop.eup %781 }
 0x33e   :  { %v291_v2 = vsel %vm275_vm3, %v782_v1, 0.0 }
 0x33f   :  { %292 = vadd.xlane.f32.xlu1 %v291_v2 }
 0x343   :  { %535 = vadd.xlane.f32.xlu1 %v534_v4 }
 0x3c8   :  { %v290_v27 = vpop.xlane.xlu1 %289 }
 0x3c9   :  { %783 = vrcp.f32 %v290_v27 }
 0x3cc   :  { %v293_v29 = vpop.xlane.xlu1 %292 }
 0x3cd   :  { %785 = vrcp.f32 %v293_v29 }
 0x3ce   :  { %787 = vrsqrt.f32 %v554_v28 }
 0x3d0   :  { %v536_v30 = vpop.xlane.xlu1 %535 }
 0x3d1   :  { %v549_v32 = vadd.f32 %v547_v23, %v536_v30 }
 0x3d3   :  { %v784_v33 = vpop.eup %783  ;;  %v553_v34 = vsub.f32 %v549_v32, %v551_v31 }
 0x3d4   :  { %v296_v36 = vmul.f32 %v784_v33, %v780_v62 }
 0x3d5   :  { %v555_v35 = vmax.f32 %v553_v34, 0.0 }
 0x3d6   :  { %v298_v41 = vsel %vm275_vm3, %v296_v36, 0.0 }
 0x3d7   :  { %v786_v37 = vpop.eup %785  ;;  %789 = vrsqrt.f32 %v555_v35  ;;  %vm565_vm7 = vcmp.eq.f32.partialorder %v555_v35, inf  ;;  %v568_v56 = vand.u32 2147483648, %v555_v35  ;;  %vm567_vm8 = vcmp.eq.f32.partialorder %v555_v35, 0.0 }
 0x3d8   :  { %v297_v38 = vmul.f32 %v786_v37, %v782_v1  ;;  %v788_v39 = vpop.eup %787 }
 0x3d9   :  { %v557_v44 = vmul.f32 %v788_v39, %v554_v28 }
 0x3da   :  { %v330_v40 = vpack.c.bf16 %v297_v38, %v296_v36  ;;  %v299_v42 = vsel %vm275_vm3, %v297_v38, 0.0 }
 0x3db   :  { %v300_v43 = vadd.f32 %v299_v42, %v298_v41  ;;  %v559_v48 = vsel %vm558_vm5, %v554_v28, %v557_v44  ;;  %vm645_vm5 = vcmask 64544  }
 0x3dc   :  { %736 = vmatmul.mubr.msk.bf16.vlgmr.msra.gmra.mrb[8].mxu0 %vm275_vm3, %v330_v40  ;;  %v562_v55 = vsel %vm560_vm6, %v561_v52, %v559_v48 }
 0x3dd   :  { %v301_v45 = vrot.slane %v300_v43, 4  ;;  %741 = vmatprep.mubr.msk.bf16.mxu0 %vm806_vm0, %v805_v0  ;;  %v570_v60 = vsel %vm275_vm3, %v562_v55, inf  ;;  %740 = vmatpush3.bf16.msra.mxu0 %v777_v10 }
 0x3df   :  { %v302_v46 = vadd.f32 %v301_v45, %v300_v43 }
 0x3e1   :  { %v790_v49 = vpop.eup %789  ;;  %v303_v50 = vrot.slane %v302_v46, 2 }
 0x3e2   :  { %v564_v53 = vmul.f32 %v790_v49, %v555_v35 }
 0x3e3   :  { %v304_v54 = vadd.f32 %v303_v50, %v302_v46 }
 0x3e4   :  { %v566_v57 = vsel %vm565_vm7, %v555_v35, %v564_v53 }
 0x3e5   :  { %v305_v58 = vrot.slane %v304_v54, 1  ;;  %v569_v59 = vsel %vm567_vm8, %v568_v56, %v566_v57 }
 0x3e6   :  { %v571_v61 = vsel %vm275_vm3, %v569_v59, inf }
 0x3e7   :  { %v306_v62 = vadd.f32 %v305_v58, %v304_v54  ;;  %v572_v63 = vmin.f32 %v570_v60, %v571_v61 }
 0x3e9   :  { %v308_v1 = vmul.f32 0.0625, %v306_v62  ;;  %v573_v2 = vrot.slane %v572_v63, 4 }
 0x3eb   :  { %v309_v3 = vsel %vm275_vm3, %v308_v1, 0.0  ;;  %v574_v4 = vmin.f32 %v572_v63, %v573_v2  ;;  %v496_v63 = vld [vmem:[%s998_s2 + $0x64] sm:$0x1] }
 0x3ec   :  { %310 = vadd.xlane.f32.xlu0 %v309_v3 }
 0x3ed   :  { %v575_v5 = vrot.slane %v574_v4, 2 }
 0x3ef   :  { %v576_v6 = vmin.f32 %v574_v4, %v575_v5 }
 0x3f1   :  { %v577_v7 = vrot.slane %v576_v6, 1 }
 0x3f3   :  { %v578_v8 = vmin.f32 %v576_v6, %v577_v7 }
 0x3f5   :  { %v579_v9 = vsel %vm319_vm9, %v578_v8, 0.0 }
 0x3f6   :  { %580 = vadd.xlane.f32.xlu0 %v579_v9 }
 0x479   :  { %v311_v11 = vpop.xlane.xlu0 %310 }
 0x47a   :  { %791 = vrcp.f32 %v311_v11 }
 0x483   :  { %v581_v35 = vpop.xlane.xlu0 %580 }
 0x484   :  { %v792_v12 = vpop.eup %791 }
 0x485   :  { %v313_v17 = vmul.f32 %v792_v12, %v308_v1  ;;  %v497_v1 = vunpack.c.l.bf16 %v496_v63 }
 0x487   :  { %vm314_vm10 = vcmp.gt.f32.partialorder %v313_v17, 0.0  ;;  %v501_v2 = vrot.slane %v497_v1, %v901_v19  ;;  %v613_v19 = vand.u32 127, %v27_v15 }
 0x488   :  { %v315_v18 = vsel %vm314_vm10, %v313_v17, 1.0 }
 0x489   :  { %793 = vlog2.f32 %v315_v18  ;;  %vm625_vm15 = vcmp.eq.s32.totalorder %v613_v19, 2  ;;  %vm622_vm0 = vcmp.eq.s32.totalorder %v613_v19, 1  ;;  %vm619_vm1 = vcmp.eq.s32.totalorder %v613_v19, 0 }
 0x48a   :  { %vm623_vm3 = vmand %vm617_vm14, %vm622_vm0 }
 0x48b   :  { %vm973_vm4 = vmand %vm617_vm14, %vm619_vm1 }
 0x493   :  { %v794_v20 = vpop.eup %793 }
 0x494   :  { %v317_v21 = vmul.f32 0.6931472, %v794_v20 }
 0x496   :  { %v318_v22 = vmul.f32 %v317_v21, %v313_v17 }
 0x498   :  { %v320_v23 = vsel %vm319_vm9, %v318_v22, 0.0 }
 0x499   :  { %321 = vadd.xlane.f32.xlu1 %v320_v23 }
 0x49d   :  { %592 = vadd.xlane.f32.xlu1 %v935_v13  ;;  %v582_v13 = vrot.slane %v581_v35, 4 }
 0x49f   :  { %v583_v36 = vadd.f32 %v582_v13, %v581_v35 }
 0x4a1   :  { %v584_v37 = vrot.slane %v583_v36, 2 }
 0x4a3   :  { %v585_v42 = vadd.f32 %v584_v37, %v583_v36 }
 0x4a5   :  { %v586_v48 = vrot.slane %v585_v42, 1 }
 0x4a7   :  { %v587_v54 = vadd.f32 %v586_v48, %v585_v42 }
 0x4af   :  { %v379_v14 = vpop.f32.mrb[8].mxu0 }
 0x4b0   :  { %v380_v27 = vadd.f32 %v379_v14, %v337_v26  ;;  %v737_v28 = vpop.f32.mrb[9].mxu0 }
 0x4b1   :  { %v382_v29 = vpop.f32.mrb[10].mxu0 }
 0x4b2   :  { %v383_v30 = vadd.f32 %v382_v29, %v337_v26  ;;  %v738_v31 = vpop.f32.mrb[11].mxu0  ;;  %v391_v32 = vmax.f32 %v380_v27, 0.0 }
 0x4b4   :  { %v392_v33 = vmax.f32 %v383_v30, 0.0 }
 0x4b6   :  { %v393_v34 = vpack.c.bf16 %v392_v33, %v391_v32 }
 0x4b8   :  { %742 = vmatmul.mubr.msk.bf16.vlgmr.msra.gmra.mrb[12].mxu0 %vm230_vm2, %v393_v34  ;;  %vm626_vm2 = vmand %vm617_vm14, %vm625_vm15 }
 0x526   :  { %v322_v38 = vpop.xlane.xlu1 %321 }
 0x527   :  { %v323_v39 = vrot.slane %v322_v38, 4 }
 0x529   :  { %v324_v40 = vadd.f32 %v323_v39, %v322_v38 }
 0x52a   :  { %v593_v41 = vpop.xlane.xlu1 %592 }
 0x52b   :  { %v325_v43 = vrot.slane %v324_v40, 2  ;;  %v594_v44 = vrot.slane %v593_v41, 4 }
 0x52d   :  { %v595_v45 = vadd.f32 %v594_v44, %v593_v41  ;;  %v326_v46 = vadd.f32 %v325_v43, %v324_v40 }
 0x52f   :  { %v596_v49 = vrot.slane %v595_v45, 2  ;;  %v327_v50 = vrot.slane %v326_v46, 1 }
 0x531   :  { %v328_v52 = vadd.f32 %v327_v50, %v326_v46  ;;  %v597_v53 = vadd.f32 %v596_v49, %v595_v45 }
 0x533   :  { %751 = vpush %v328_v52  ;;  %v598_v55 = vrot.slane %v597_v53, 1 }
 0x534   :  { %753 = vpush %v587_v54 }
 0x535   :  { %v599_v56 = vadd.f32 %v598_v55, %v597_v53 }
 0x537   :  { %755 = vpush %v599_v56 }
 0x564   :  { %s958_s23 = spop %751 }
 0x565   :  { %s960_s24 = spop %753  ;;  %v631_v17 = vstv %s958_s23 }
 0x566   :  { %s591_s2 = smul.f32 0.125, %s960_s24 }
 0x568   :  { %s756_s25 = spop %755  ;;  %v634_v20 = vstv %s591_s2 }
 0x569   :  { %v601_v57 = vstv %s756_s25 }
 0x56a   :  { %795 = vrsqrt.f32 %v601_v57  ;;  %vm604_vm11 = vcmp.eq.f32.partialorder %v601_v57, inf  ;;  %v607_v59 = vand.u32 2147483648, %v601_v57  ;;  %vm606_vm12 = vcmp.eq.f32.partialorder %v601_v57, 0.0 }
 0x574   :  { %v796_v58 = vpop.eup %795 }
 0x575   :  { %v603_v60 = vmul.f32 %v796_v58, %v601_v57 }
 0x577   :  { %v605_v61 = vsel %vm604_vm11, %v601_v57, %v603_v60 }
 0x578   :  { %v608_v62 = vsel %vm606_vm12, %v607_v59, %v605_v61 }
 0x579   :  { %757 = vpush %v608_v62 }
 0x58b   :  { %v439_v3 = vpop.f32.mrb[12].mxu0 }
 0x58c   :  { %v490_v4 = vadd.f32 %v918_v47, %v439_v3  ;;  %v743_v5 = vpop.f32.mrb[13].mxu0 }
 0x58d   :  { %v442_v6 = vpop.f32.mrb[14].mxu0 }
 0x58e   :  { %v493_v7 = vadd.f32 %v920_v51, %v442_v6  ;;  %v744_v8 = vpop.f32.mrb[15].mxu0  ;;  %v502_v9 = vadd.f32 %v501_v2, %v490_v4 }
 0x590   :  { %v505_v10 = vsel %vm504_vm13, %v502_v9, -inf  ;;  %v503_v11 = vadd.f32 %v501_v2, %v493_v7 }
 0x591   :  { %506 = vmax.xlane.f32.xlu0 %v505_v10 }
 0x592   :  { %v508_v12 = vsel %vm504_vm13, %v503_v11, -inf }
 0x593   :  { %509 = vmax.xlane.f32.xlu1 %v508_v12 }
 0x5aa   :  { %s758_s28 = spop %757 }
 0x5ab   :  { %v628_v47 = vstv %s758_s28 }
 0x5ac   :  { %v629_v18 = vsel %vm626_vm2, %v628_v47, 0.0 }
 0x5ad   :  { %v632_v21 = vsel %vm623_vm3, %v631_v17, %v629_v18 }
 0x5ae   :  { %v635_v15 = vsel %vm973_vm4, %v634_v20, %v632_v21 }
 0x61e   :  { %v507_v16 = vpop.xlane.xlu0 %506 }
 0x61f   :  { %v511_v22 = vsub.f32 %v502_v9, %v507_v16 }
 0x620   :  { %v510_v23 = vpop.xlane.xlu1 %509 }
 0x621   :  { %v513_v24 = vmul.f32 1.442695, %v511_v22  ;;  %v512_v25 = vsub.f32 %v503_v11, %v510_v23 }
 0x623   :  { %797 = vpow2.f32 %v513_v24  ;;  %v515_v26 = vmul.f32 1.442695, %v512_v25 }
 0x625   :  { %799 = vpow2.f32 %v515_v26 }
 0x62d   :  { %v798_v14 = vpop.eup %797 }
 0x62e   :  { %v517_v27 = vsel %vm504_vm13, %v798_v14, 0.0 }
 0x62f   :  { %v800_v28 = vpop.eup %799  ;;  %518 = vadd.xlane.f32.xlu0 %v517_v27 }
 0x630   :  { %v520_v29 = vsel %vm504_vm13, %v800_v28, 0.0 }
 0x631   :  { %521 = vadd.xlane.f32.xlu1 %v520_v29 }
 0x642   :  { %641 = vrot.lane.b32.xlu1 %v805_v0, %s807_s29 }
 0x645   :  { %639 = vrot.lane.b32.xlu0 %v635_v15, %s807_s29 }
 0x6bc   :  { %v519_v30 = vpop.xlane.xlu0 %518 }
 0x6bd   :  { %801 = vlog2.f32 %v519_v30 }
 0x6be   :  { %v522_v31 = vpop.xlane.xlu1 %521 }
 0x6bf   :  { %803 = vlog2.f32 %v522_v31 }
 0x6c0   :  { %v640_v37 = vpop.permute.xlu0 %639 }
 0x6c2   :  { %v642_v38 = vpop.permute.xlu1 %641 }
 0x6c7   :  { %v802_v32 = vpop.eup %801 }
 0x6c8   :  { %v524_v33 = vmul.f32 0.6931472, %v802_v32 }
 0x6c9   :  { %v804_v34 = vpop.eup %803 }
 0x6ca   :  { %v527_v35 = vsub.f32 %v511_v22, %v524_v33  ;;  %v526_v13 = vmul.f32 0.6931472, %v804_v34 }
 0x6cc   :  { %v528_v36 = vsub.f32 %v512_v25, %v526_v13  ;;  %610 = vst.msk [vmem:[%s1000_s3] sm:$0xff] %vm504_vm13, %v527_v35 }
 0x6cd   :  { %646 = vst.msk [vmem:[%s1000_s3] sm:$0xff] %vm645_vm5, %v640_v37 }
 0x6ce   :  { %611 = vst.msk [vmem:[%s1000_s3 + $0x8] sm:$0xff] %vm504_vm13, %v528_v36 }
 0x6cf   :  { %647 = vst.msk [vmem:[%s1000_s3 + $0x8] sm:$0xff] %vm645_vm5, %v642_v38 }

</bundles_post_ra>
